<compile_context>
chip_gen: v7x
topology: tpu7x:2x2x1
jax: 0.10.0
libtpu: 0.0.40
codegen_flags: <defaults>
</compile_context>

<pallas_src>
import jax
import jax.numpy as jnp
from jax import lax
from jax.experimental import pallas as pl
from jax.experimental.pallas import tpu as pltpu


_ONEHOT_VOCAB_MAX = 2048   # below this, the lookup runs as a one-hot MXU matmul


def _fe_kernel_onehot(ids_ref, table_ref, w_ref, out_ref):
    """One-hot MXU lookup (small V).

    ids_ref:   (tile_n, 1) int32, VMEM block (moves per grid step)
    table_ref: (V, F)  bf16, VMEM-resident
    w_ref:     (F, H)  bf16, VMEM-resident
    out_ref:   (tile_n, H) f32
    """
    tile_n = out_ref.shape[0]
    v = table_ref.shape[0]

    ids = ids_ref[...]                                            # (tile_n, 1)
    iota_v = lax.broadcasted_iota(jnp.int32, (tile_n, v), 1)      # (tile_n, V)
    onehot = (iota_v == ids).astype(jnp.bfloat16)                 # exact 0/1

    # (tile_n, V) @ (V, F): picks exact bf16 table rows into an f32 accumulator.
    e = jnp.dot(onehot, table_ref[...], preferred_element_type=jnp.float32)
    # (tile_n, F) @ (F, H): factorized projection, bf16 operands, f32 acc.
    out_ref[...] = jnp.dot(
        e.astype(jnp.bfloat16), w_ref[...], preferred_element_type=jnp.float32
    )


def _fe_kernel_gather(ids_ref, table_ref, w_ref, out_ref):
    """Vectorized sublane-gather lookup (larger V, table still VMEM-resident)."""
    ids = ids_ref[...][:, 0]                                      # (tile_n,)
    e = jnp.take(table_ref[...], ids, axis=0)                     # (tile_n, F) bf16
    out_ref[...] = jnp.dot(e, w_ref[...], preferred_element_type=jnp.float32)


def factorized_embedding(input_ids, table_VF, w_FH, *, tile_n=512):
    """input_ids: (B, S) int; table_VF: (V, F) f32; w_FH: (F, H) f32 -> (B, S, H) f32."""
    B, S = input_ids.shape
    V, F = table_VF.shape
    H = w_FH.shape[1]
    N = B * S
    num_tiles = pl.cdiv(N, tile_n)
    n_pad = num_tiles * tile_n

    # nn.Embedding would raise on out-of-range ids; here they are clamped.
    ids = jnp.clip(input_ids.reshape(N, 1).astype(jnp.int32), 0, V - 1)
    ids = jnp.pad(ids, ((0, n_pad - N), (0, 0)))     # padded tokens -> row 0 (discarded)

    # bf16 storage: both tensors are only ever consumed as bf16 MXU operands,
    # so this halves the resident footprint and the one-time HBM->VMEM DMA.
    table_bf16 = table_VF.astype(jnp.bfloat16)
    w_bf16 = w_FH.astype(jnp.bfloat16)

    use_onehot = V <= _ONEHOT_VOCAB_MAX
    kernel = _fe_kernel_onehot if use_onehot else _fe_kernel_gather

    # Generation-aware VMEM budget (v5e/v6e: 128 MiB, v7x: 64 MiB per TC).
    try:
        vmem_cap = int(pltpu.get_tpu_info().vmem_capacity_bytes)
    except Exception:
        vmem_cap = 64 * 1024 * 1024
    resident_bytes = V * F * 2 + F * H * 2                         # bf16 table + weight
    per_tile_bytes = 2 * (tile_n * H * 4 + tile_n * 4)             # double-buffered out + ids
    needed = resident_bytes + per_tile_bytes + (8 << 20)           # headroom (onehot/e temps)
    vmem_limit = int(min(max(needed, 32 << 20), int(0.85 * vmem_cap)))

    lookup_flops = 2 * n_pad * V * F if use_onehot else 0
    cost = pl.CostEstimate(
        flops=lookup_flops + 2 * n_pad * F * H,
        transcendentals=0,
        bytes_accessed=4 * n_pad + 2 * V * F + 2 * F * H + 4 * n_pad * H,
    )

    grid_spec = pl.GridSpec(
        grid=(num_tiles,),
        in_specs=[
            pl.BlockSpec((tile_n, 1), lambda i: (i, 0)),     # per-tile ids (VMEM)
            pl.BlockSpec((V, F), lambda i: (0, 0)),          # factor table, VMEM-resident
            pl.BlockSpec((F, H), lambda i: (0, 0)),          # projection,   VMEM-resident
        ],
        out_specs=pl.BlockSpec((tile_n, H), lambda i: (i, 0)),
    )

    out = pl.pallas_call(
        kernel,
        out_shape=jax.ShapeDtypeStruct((n_pad, H), jnp.float32),
        grid_spec=grid_spec,
        compiler_params=pltpu.CompilerParams(
            dimension_semantics=("parallel",),
            vmem_limit_bytes=vmem_limit,
        ),
        cost_estimate=cost,
    )(ids, table_bf16, w_bf16)

    return out[:N].reshape(B, S, H)


def build_params(key, num_embeddings, embedding_dim, factor_size):
    """Mirror FactorizedEmbedding.__init__: SVD-factorize a deterministic source table."""
    source_embeds = jax.random.normal(
        key, (num_embeddings, embedding_dim), dtype=jnp.float32
    )
    U, S, Vh = jnp.linalg.svd(source_embeds, full_matrices=False)
    table_VF = U[:, :factor_size]                                 # embeddings_VE.weight
    # PyTorch stores linear_EH.weight = Vh.T * S (shape (H, F)); forward uses weight.T,
    # so the effective (F, H) projection is S[:, None] * Vh.
    w_FH = S[:factor_size][:, None] * Vh[:factor_size, :]
    return table_VF.astype(jnp.float32), w_FH.astype(jnp.float32)


if __name__ == "__main__":
    # Small, module-consistent shapes (H = 128 keeps the output lane-dense).
    num_embeddings = 64     # vocab V
    embedding_dim = 128     # hidden H
    factor_size = 32        # factor F
    batch, seq = 2, 8

    key = jax.random.PRNGKey(0)
    k_src, k_ids = jax.random.split(key)

    table_VF, w_FH = build_params(k_src, num_embeddings, embedding_dim, factor_size)
    input_ids = jax.random.randint(k_ids, (batch, seq), 0, num_embeddings, dtype=jnp.int32)

    out = factorized_embedding(input_ids, table_VF, w_FH)
    out = jax.block_until_ready(out)

    # Matched-precision reference (same bf16 operands as the kernel): tight check.
    E = jnp.take(table_VF, input_ids.reshape(-1), axis=0)
    ref_bf16 = jnp.dot(E.astype(jnp.bfloat16), w_FH.astype(jnp.bfloat16),
                       preferred_element_type=jnp.float32).reshape(batch, seq, embedding_dim)
    # Pure-f32 module reference: loose check (bf16 MXU operands).
    ref_f32 = (E @ w_FH).reshape(batch, seq, embedding_dim)

    assert out.shape == (batch, seq, embedding_dim)
    assert out.dtype == jnp.float32
    assert jnp.allclose(out, ref_bf16, atol=1e-3, rtol=1e-3)
    assert jnp.allclose(out, ref_f32, atol=5e-2, rtol=5e-2)

    print("KERNEL_OK")
</pallas_src>

<mosaic_0001>
module attributes {stable_mosaic.version = 11 : i64} {
  func.func @_fe_kernel_onehot(%arg0: i32, %arg1: memref<512x1xi32, #tpu.memory_space<vmem>>, %arg2: memref<64x32xbf16, #tpu.memory_space<vmem>>, %arg3: memref<32x128xbf16, #tpu.memory_space<vmem>>, %arg4: memref<512x128xf32, #tpu.memory_space<vmem>>) attributes {dimension_semantics = [#tpu.dimension_semantics<parallel>], iteration_bounds = array<i64: 1>, scalar_prefetch = 0 : i64, scratch_operands = 0 : i64, tpu.core_type = #tpu.core_type<tc>, window_params = [{transform_indices = @transform_0, window_bounds = array<i64: 512, 1>}, {pipeline_mode = #tpu.pipeline_mode<synchronous>, transform_indices = @transform_1, window_bounds = array<i64: 64, 32>}, {pipeline_mode = #tpu.pipeline_mode<synchronous>, transform_indices = @transform_2, window_bounds = array<i64: 32, 128>}, {transform_indices = @transform_3, window_bounds = array<i64: 512, 128>}]} {
    %c0 = arith.constant 0 : index
    %c0_0 = arith.constant 0 : index
    %0 = vector.load %arg1[%c0, %c0_0] : memref<512x1xi32, #tpu.memory_space<vmem>>, vector<512x1xi32>
    %1 = tpu.iota {dimensions = array<i32: 1>} : vector<512x64xi32>
    %2 = vector.broadcast %0 : vector<512x1xi32> to vector<512x64xi32>
    %3 = arith.cmpi eq, %1, %2 : vector<512x64xi32>
    %4 = arith.extui %3 : vector<512x64xi1> to vector<512x64xi32>
    %5 = arith.sitofp %4 : vector<512x64xi32> to vector<512x64xf32>
    %6 = arith.truncf %5 : vector<512x64xf32> to vector<512x64xbf16>
    %c0_1 = arith.constant 0 : index
    %c0_2 = arith.constant 0 : index
    %7 = vector.load %arg2[%c0_1, %c0_2] : memref<64x32xbf16, #tpu.memory_space<vmem>>, vector<64x32xbf16>
    %cst = arith.constant dense<0.000000e+00> : vector<512x32xf32>
    %8 = tpu.matmul %6, %7, %cst {dimension_numbers = #tpu.dot_dimension_numbers<[1], [0], [0], [1], [0, 0, 1, 1], [], []>} : vector<512x64xbf16>, vector<64x32xbf16>, vector<512x32xf32> -> vector<512x32xf32>
    %9 = arith.truncf %8 : vector<512x32xf32> to vector<512x32xbf16>
    %c0_3 = arith.constant 0 : index
    %c0_4 = arith.constant 0 : index
    %10 = vector.load %arg3[%c0_3, %c0_4] : memref<32x128xbf16, #tpu.memory_space<vmem>>, vector<32x128xbf16>
    %cst_5 = arith.constant dense<0.000000e+00> : vector<512x128xf32>
    %11 = tpu.matmul %9, %10, %cst_5 {dimension_numbers = #tpu.dot_dimension_numbers<[1], [0], [0], [1], [0, 0, 1, 1], [], []>} : vector<512x32xbf16>, vector<32x128xbf16>, vector<512x128xf32> -> vector<512x128xf32>
    %c0_6 = arith.constant 0 : index
    %c0_7 = arith.constant 0 : index
    %12 = vector.load %arg4[%c0_6, %c0_7] : memref<512x128xf32, #tpu.memory_space<vmem>>, vector<512x128xf32>
    tpu.vector_store %arg4[%c0_6, %c0_7], %11 {strides = array<i32>} : memref<512x128xf32, #tpu.memory_space<vmem>>, vector<512x128xf32>,
    return
  }
  func.func @transform_0(%arg0: i32) -> (i32, i32) {
    %c0_i32 = arith.constant 0 : i32
    %c0_i32_0 = arith.constant 0 : i32
    return %arg0, %c0_i32 : i32, i32
  }
  func.func @transform_1(%arg0: i32) -> (i32, i32) {
    %c0_i32 = arith.constant 0 : i32
    %c0_i32_0 = arith.constant 0 : i32
    %c0_i32_1 = arith.constant 0 : i32
    return %c0_i32, %c0_i32_0 : i32, i32
  }
  func.func @transform_2(%arg0: i32) -> (i32, i32) {
    %c0_i32 = arith.constant 0 : i32
    %c0_i32_0 = arith.constant 0 : i32
    %c0_i32_1 = arith.constant 0 : i32
    return %c0_i32, %c0_i32_0 : i32, i32
  }
  func.func @transform_3(%arg0: i32) -> (i32, i32) {
    %c0_i32 = arith.constant 0 : i32
    %c0_i32_0 = arith.constant 0 : i32
    return %arg0, %c0_i32 : i32, i32
  }
}

</mosaic_0001>

<bundles_post_ra>
// kernel: tpu_custom_call.1
= control target key start
LH: loop header
LB: loop body
LE: loop exit
PB: predicated region body
PF: predicated region fallthrough
CT: control target
= control target key end

     0   :  { %v1811_v2 = vmov 0   ;;  %s2252_s0 = inlined_call_operand.vmem [shape: s32[512,1], index: 0, kind: input, shape index: {}]   ;;  %s2253_s1 = inlined_call_operand.vmem [shape: bf16[64,32], index: 1, kind: input, shape index: {}]   ;;  %s2254_s2 = inlined_call_operand.vmem [shape: bf16[32,128], index: 2, kind: input, shape index: {}]   ;;  %s2255_s3 = inlined_call_operand.hbm [shape: f32[512,128], index: 3, kind: output, shape index: {}]  }
   0x1   :  { %v18_v0 = vld [vmem:[%s2252_s0 + $0x10] sm:$0xff]  ;;  %v16_v1 = vld [vmem:[%s2252_s0] sm:$0xff]  ;;  %1780 = vset.pattern.permute.xlu1 %v1811_v2  ;;  %1779 = vset.pattern.permute.xlu0 %v1811_v2  ;;  %v19_v3 = vld [vmem:[%s2252_s0 + $0x18] sm:$0xff] }
   0x2   :  { %89 = vperm.xlu1 %1780, %v18_v0   ;;  %83 = vperm.xlu0 %1779, %v16_v1   ;;  %v17_v4 = vld [vmem:[%s2252_s0 + $0x8] sm:$0xff]  ;;  %v20_v6 = vld [vmem:[%s2252_s0 + $0x20] sm:$0xff]  ;;  %v23_v7 = vld [vmem:[%s2252_s0 + $0x38] sm:$0xff] }
   0x3   :  { %v21_v5 = vld [vmem:[%s2252_s0 + $0x28] sm:$0xff]  ;;  %v22_v8 = vld [vmem:[%s2252_s0 + $0x30] sm:$0xff]  ;;  %v24_v10 = vld [vmem:[%s2252_s0 + $0x40] sm:$0xff] }
   0x4   :  { %v25_v9 = vld [vmem:[%s2252_s0 + $0x48] sm:$0xff]  ;;  %v27_v11 = vld [vmem:[%s2252_s0 + $0x58] sm:$0xff]  ;;  %v26_v12 = vld [vmem:[%s2252_s0 + $0x50] sm:$0xff] }
   0x5   :  { %v29_v13 = vld [vmem:[%s2252_s0 + $0x68] sm:$0xff]  ;;  %v1781_v14 = vld [vmem:[%s2253_s1] sm:$0xff]   ;;  %v1783_v17 = vld [vmem:[%s2253_s1 + $0x10] sm:$0xff]  }
   0x6   :  { %92 = vperm.xlu1 %1780, %v19_v3   ;;  %86 = vperm.xlu0 %1779, %v17_v4   ;;  %v28_v15 = vld [vmem:[%s2252_s0 + $0x60] sm:$0xff]  ;;  %v1782_v16 = vld [vmem:[%s2253_s1 + $0x8] sm:$0xff]  }
   0x7   :  { %1634 = vmatprep.subr.bf16.mxu0 %v1781_v14 }
   0x8   :  { %1635 = vmatpush3.bf16.msra.mxu0 %v1781_v14 }
   0x9   :  { %1636 = vmatprep.subr.bf16.mxu0 %v1782_v16 }
   0xa   :  { %98 = vperm.xlu1 %1780, %v21_v5   ;;  %95 = vperm.xlu0 %1779, %v20_v6  }
   0xe   :  { %104 = vperm.xlu1 %1780, %v23_v7   ;;  %101 = vperm.xlu0 %1779, %v22_v8  }
  0x12   :  { %110 = vperm.xlu1 %1780, %v25_v9   ;;  %107 = vperm.xlu0 %1779, %v24_v10  }
  0x16   :  { %116 = vperm.xlu1 %1780, %v27_v11   ;;  %113 = vperm.xlu0 %1779, %v26_v12  }
  0x1a   :  { %122 = vperm.xlu1 %1780, %v29_v13   ;;  %119 = vperm.xlu0 %1779, %v28_v15  }
  0x1b   :  { %8 = vsyncpa [#allocation3], 0  ;;  %v31_v18 = vld [vmem:[%s2252_s0 + $0x78] sm:$0xff]  ;;  %v30_v19 = vld [vmem:[%s2252_s0 + $0x70] sm:$0xff]  ;;  %1637 = vmatpush3.bf16.msra.mxu0 %v1782_v16  ;;  %v80_v5 = vlaneseq  ;;  %vm530_vm4 = vcmask 523264   ;;  %v1812_v12 = vmov 0.0  }
  0x1c   :  { %1638 = vmatprep.subr.bf16.mxu0 %v1783_v17  ;;  %v1784_v20 = vld [vmem:[%s2253_s1 + $0x18] sm:$0xff]   ;;  %v33_v21 = vld [vmem:[%s2252_s0 + $0x88] sm:$0xff]  ;;  %v32_v22 = vld [vmem:[%s2252_s0 + $0x80] sm:$0xff] }
  0x1d   :  { %v35_v23 = vld [vmem:[%s2252_s0 + $0x98] sm:$0xff]  ;;  %v34_v24 = vld [vmem:[%s2252_s0 + $0x90] sm:$0xff]  ;;  %v37_v25 = vld [vmem:[%s2252_s0 + $0xa8] sm:$0xff]  ;;  %v2040_v6 = vand.u32 127, %v80_v5 }
  0x1e   :  { %128 = vperm.xlu1 %1780, %v31_v18   ;;  %125 = vperm.xlu0 %1779, %v30_v19   ;;  %v36_v26 = vld [vmem:[%s2252_s0 + $0xa0] sm:$0xff]  ;;  %v39_v27 = vld [vmem:[%s2252_s0 + $0xb8] sm:$0xff]  ;;  %v38_v28 = vld [vmem:[%s2252_s0 + $0xb0] sm:$0xff] }
  0x1f   :  { %1639 = vmatpush3.bf16.msra.mxu0 %v1783_v17  ;;  %v41_v29 = vld [vmem:[%s2252_s0 + $0xc8] sm:$0xff]  ;;  %v40_v30 = vld [vmem:[%s2252_s0 + $0xc0] sm:$0xff]  ;;  %v43_v31 = vld [vmem:[%s2252_s0 + $0xd8] sm:$0xff] }
  0x20   :  { %1640 = vmatprep.subr.bf16.mxu0 %v1784_v20  ;;  %v42_v32 = vld [vmem:[%s2252_s0 + $0xd0] sm:$0xff]  ;;  %v45_v33 = vld [vmem:[%s2252_s0 + $0xe8] sm:$0xff]  ;;  %v44_v34 = vld [vmem:[%s2252_s0 + $0xe0] sm:$0xff] }
  0x21   :  { %v47_v35 = vld [vmem:[%s2252_s0 + $0xf8] sm:$0xff]  ;;  %v46_v36 = vld [vmem:[%s2252_s0 + $0xf0] sm:$0xff]  ;;  %v49_v37 = vld [vmem:[%s2252_s0 + $0x108] sm:$0xff] }
  0x22   :  { %134 = vperm.xlu1 %1780, %v33_v21   ;;  %131 = vperm.xlu0 %1779, %v32_v22   ;;  %v48_v38 = vld [vmem:[%s2252_s0 + $0x100] sm:$0xff]  ;;  %v51_v39 = vld [vmem:[%s2252_s0 + $0x118] sm:$0xff]  ;;  %v50_v40 = vld [vmem:[%s2252_s0 + $0x110] sm:$0xff] }
  0x23   :  { %1641 = vmatpush3.bf16.msra.mxu0 %v1784_v20  ;;  %v53_v41 = vld [vmem:[%s2252_s0 + $0x128] sm:$0xff]  ;;  %v52_v42 = vld [vmem:[%s2252_s0 + $0x120] sm:$0xff]  ;;  %v55_v43 = vld [vmem:[%s2252_s0 + $0x138] sm:$0xff] }
  0x24   :  { %v54_v44 = vld [vmem:[%s2252_s0 + $0x130] sm:$0xff]  ;;  %v57_v45 = vld [vmem:[%s2252_s0 + $0x148] sm:$0xff]  ;;  %v56_v46 = vld [vmem:[%s2252_s0 + $0x140] sm:$0xff] }
  0x25   :  { %v59_v47 = vld [vmem:[%s2252_s0 + $0x158] sm:$0xff]  ;;  %v58_v48 = vld [vmem:[%s2252_s0 + $0x150] sm:$0xff]  ;;  %v61_v49 = vld [vmem:[%s2252_s0 + $0x168] sm:$0xff] }
  0x26   :  { %140 = vperm.xlu1 %1780, %v35_v23   ;;  %137 = vperm.xlu0 %1779, %v34_v24   ;;  %v60_v50 = vld [vmem:[%s2252_s0 + $0x160] sm:$0xff]  ;;  %v63_v51 = vld [vmem:[%s2252_s0 + $0x178] sm:$0xff]  ;;  %v62_v52 = vld [vmem:[%s2252_s0 + $0x170] sm:$0xff] }
  0x27   :  { %v65_v53 = vld [vmem:[%s2252_s0 + $0x188] sm:$0xff]  ;;  %v64_v54 = vld [vmem:[%s2252_s0 + $0x180] sm:$0xff]  ;;  %v67_v55 = vld [vmem:[%s2252_s0 + $0x198] sm:$0xff] }
  0x28   :  { %v66_v56 = vld [vmem:[%s2252_s0 + $0x190] sm:$0xff]  ;;  %v69_v57 = vld [vmem:[%s2252_s0 + $0x1a8] sm:$0xff]  ;;  %v68_v58 = vld [vmem:[%s2252_s0 + $0x1a0] sm:$0xff] }
  0x29   :  { %v71_v59 = vld [vmem:[%s2252_s0 + $0x1b8] sm:$0xff]  ;;  %v70_v60 = vld [vmem:[%s2252_s0 + $0x1b0] sm:$0xff]  ;;  %v73_v61 = vld [vmem:[%s2252_s0 + $0x1c8] sm:$0xff] }
  0x2a   :  { %146 = vperm.xlu1 %1780, %v37_v25   ;;  %143 = vperm.xlu0 %1779, %v36_v26   ;;  %v72_v62 = vld [vmem:[%s2252_s0 + $0x1c0] sm:$0xff]  ;;  %v75_v63 = vld [vmem:[%s2252_s0 + $0x1d8] sm:$0xff]  ;;  %v74_v0 = vld [vmem:[%s2252_s0 + $0x1d0] sm:$0xff] }
  0x2b   :  { %v77_v1 = vld [vmem:[%s2252_s0 + $0x1e8] sm:$0xff]  ;;  %v76_v2 = vld [vmem:[%s2252_s0 + $0x1e0] sm:$0xff]  ;;  %v79_v3 = vld [vmem:[%s2252_s0 + $0x1f8] sm:$0xff] }
  0x2c   :  { %v78_v4 = vld [vmem:[%s2252_s0 + $0x1f0] sm:$0xff]  ;;  %v1785_v9 = vld [vmem:[%s2254_s2] sm:$0xff]  }
  0x2d   :  { %1706 = vmatprep.subr.bf16.mxu1 %v1785_v9 }
  0x2e   :  { %152 = vperm.xlu1 %1780, %v39_v27   ;;  %149 = vperm.xlu0 %1779, %v38_v28  }
  0x2f   :  { %1707 = vmatpush3.bf16.msra.mxu1 %v1785_v9 }
  0x32   :  { %158 = vperm.xlu1 %1780, %v41_v29   ;;  %155 = vperm.xlu0 %1779, %v40_v30  }
  0x36   :  { %164 = vperm.xlu1 %1780, %v43_v31   ;;  %161 = vperm.xlu0 %1779, %v42_v32  }
  0x3a   :  { %170 = vperm.xlu1 %1780, %v45_v33   ;;  %167 = vperm.xlu0 %1779, %v44_v34  }
  0x3e   :  { %176 = vperm.xlu1 %1780, %v47_v35   ;;  %173 = vperm.xlu0 %1779, %v46_v36  }
  0x42   :  { %182 = vperm.xlu1 %1780, %v49_v37   ;;  %179 = vperm.xlu0 %1779, %v48_v38  }
  0x46   :  { %188 = vperm.xlu1 %1780, %v51_v39   ;;  %185 = vperm.xlu0 %1779, %v50_v40  }
  0x4a   :  { %194 = vperm.xlu1 %1780, %v53_v41   ;;  %191 = vperm.xlu0 %1779, %v52_v42  }
  0x4e   :  { %200 = vperm.xlu1 %1780, %v55_v43   ;;  %197 = vperm.xlu0 %1779, %v54_v44  }
  0x52   :  { %206 = vperm.xlu1 %1780, %v57_v45   ;;  %203 = vperm.xlu0 %1779, %v56_v46  }
  0x56   :  { %212 = vperm.xlu1 %1780, %v59_v47   ;;  %209 = vperm.xlu0 %1779, %v58_v48  }
  0x5a   :  { %218 = vperm.xlu1 %1780, %v61_v49   ;;  %215 = vperm.xlu0 %1779, %v60_v50  }
  0x5e   :  { %224 = vperm.xlu1 %1780, %v63_v51   ;;  %221 = vperm.xlu0 %1779, %v62_v52  }
  0x62   :  { %230 = vperm.xlu1 %1780, %v65_v53   ;;  %227 = vperm.xlu0 %1779, %v64_v54  }
  0x66   :  { %236 = vperm.xlu1 %1780, %v67_v55   ;;  %233 = vperm.xlu0 %1779, %v66_v56  }
  0x6a   :  { %242 = vperm.xlu1 %1780, %v69_v57   ;;  %239 = vperm.xlu0 %1779, %v68_v58  }
  0x6e   :  { %248 = vperm.xlu1 %1780, %v71_v59   ;;  %245 = vperm.xlu0 %1779, %v70_v60  }
  0x72   :  { %254 = vperm.xlu1 %1780, %v73_v61   ;;  %251 = vperm.xlu0 %1779, %v72_v62  }
  0x76   :  { %260 = vperm.xlu1 %1780, %v75_v63   ;;  %257 = vperm.xlu0 %1779, %v74_v0  }
  0x7a   :  { %266 = vperm.xlu1 %1780, %v77_v1   ;;  %263 = vperm.xlu0 %1779, %v76_v2  }
  0x7e   :  { %272 = vperm.xlu1 %1780, %v79_v3   ;;  %269 = vperm.xlu0 %1779, %v78_v4  }
  0x81   :  { %v90_v7 = vpop.permute.xlu1 %89  ;;  %v84_v8 = vpop.permute.xlu0 %83 }
  0x82   :  { %vm276_vm0 = vcmp.eq.s32.totalorder %v2040_v6, %v90_v7  ;;  %vm274_vm1 = vcmp.eq.s32.totalorder %v2040_v6, %v84_v8 }
  0x83   :  { %v1432_v13 = vsel %vm276_vm0, 1.0, %v1812_v12  ;;  %v1430_v14 = vsel %vm274_vm1, 1.0, %v1812_v12 }
  0x85   :  { %v93_v10 = vpop.permute.xlu1 %92  ;;  %v87_v11 = vpop.permute.xlu0 %86 }
  0x86   :  { %vm277_vm2 = vcmp.eq.s32.totalorder %v2040_v6, %v93_v10  ;;  %vm275_vm3 = vcmp.eq.s32.totalorder %v2040_v6, %v87_v11 }
  0x87   :  { %v1433_v15 = vsel %vm277_vm2, 1.0, %v1812_v12  ;;  %v1431_v16 = vsel %vm275_vm3, 1.0, %v1812_v12 }
  0x88   :  { %v467_v17 = vpack.c.bf16 %v1433_v15, %v1432_v13  ;;  %v466_v18 = vpack.c.bf16 %v1431_v16, %v1430_v14 }
  0x89   :  { %v99_v19 = vpop.permute.xlu1 %98  ;;  %v96_v20 = vpop.permute.xlu0 %95 }
  0x8a   :  { %vm279_vm5 = vcmp.eq.s32.totalorder %v2040_v6, %v99_v19  ;;  %vm278_vm6 = vcmp.eq.s32.totalorder %v2040_v6, %v96_v20  ;;  %1642 = vmatprep.mubr.msk.bf16.mxu0 %vm530_vm4, %v466_v18 }
  0x8b   :  { %v1435_v21 = vsel %vm279_vm5, 1.0, %v1812_v12  ;;  %v1434_v22 = vsel %vm278_vm6, 1.0, %v1812_v12  ;;  %1643 = vmatmul.mubr.msk.bf16.vlgmr.msra.gmra.mrb[0].mxu0 %vm530_vm4, %v467_v17 }
  0x8c   :  { %v468_v23 = vpack.c.bf16 %v1435_v21, %v1434_v22 }
  0x8d   :  { %v105_v24 = vpop.permute.xlu1 %104  ;;  %v102_v25 = vpop.permute.xlu0 %101 }
  0x8e   :  { %vm281_vm7 = vcmp.eq.s32.totalorder %v2040_v6, %v105_v24  ;;  %vm280_vm8 = vcmp.eq.s32.totalorder %v2040_v6, %v102_v25  ;;  %1646 = vmatprep.mubr.msk.bf16.mxu0 %vm530_vm4, %v468_v23 }
  0x8f   :  { %v1437_v26 = vsel %vm281_vm7, 1.0, %v1812_v12  ;;  %v1436_v27 = vsel %vm280_vm8, 1.0, %v1812_v12 }
  0x90   :  { %v469_v28 = vpack.c.bf16 %v1437_v26, %v1436_v27 }
  0x91   :  { %v111_v29 = vpop.permute.xlu1 %110  ;;  %v108_v30 = vpop.permute.xlu0 %107 }
  0x92   :  { %vm283_vm9 = vcmp.eq.s32.totalorder %v2040_v6, %v111_v29  ;;  %vm282_vm10 = vcmp.eq.s32.totalorder %v2040_v6, %v108_v30 }
  0x93   :  { %v1439_v31 = vsel %vm283_vm9, 1.0, %v1812_v12  ;;  %v1438_v32 = vsel %vm282_vm10, 1.0, %v1812_v12  ;;  %1647 = vmatmul.mubr.msk.bf16.gmra.mrb[4].mxu0 %vm530_vm4, %v469_v28 }
  0x94   :  { %v470_v33 = vpack.c.bf16 %v1439_v31, %v1438_v32 }
  0x95   :  { %v117_v34 = vpop.permute.xlu1 %116  ;;  %v114_v35 = vpop.permute.xlu0 %113 }
  0x96   :  { %vm285_vm11 = vcmp.eq.s32.totalorder %v2040_v6, %v117_v34  ;;  %vm284_vm12 = vcmp.eq.s32.totalorder %v2040_v6, %v114_v35  ;;  %1650 = vmatprep.mubr.msk.bf16.mxu0 %vm530_vm4, %v470_v33 }
  0x97   :  { %v1441_v36 = vsel %vm285_vm11, 1.0, %v1812_v12  ;;  %v1440_v37 = vsel %vm284_vm12, 1.0, %v1812_v12 }
  0x98   :  { %v471_v38 = vpack.c.bf16 %v1441_v36, %v1440_v37 }
  0x99   :  { %v123_v39 = vpop.permute.xlu1 %122  ;;  %v120_v40 = vpop.permute.xlu0 %119 }
  0x9a   :  { %vm287_vm13 = vcmp.eq.s32.totalorder %v2040_v6, %v123_v39  ;;  %vm286_vm14 = vcmp.eq.s32.totalorder %v2040_v6, %v120_v40 }
  0x9b   :  { %v1443_v41 = vsel %vm287_vm13, 1.0, %v1812_v12  ;;  %v1442_v42 = vsel %vm286_vm14, 1.0, %v1812_v12  ;;  %1651 = vmatmul.mubr.msk.bf16.gmra.mrb[8].mxu0 %vm530_vm4, %v471_v38 }
  0x9c   :  { %v472_v43 = vpack.c.bf16 %v1443_v41, %v1442_v42 }
  0x9d   :  { %v129_v44 = vpop.permute.xlu1 %128  ;;  %v126_v45 = vpop.permute.xlu0 %125 }
  0x9e   :  { %vm289_vm15 = vcmp.eq.s32.totalorder %v2040_v6, %v129_v44  ;;  %vm288_vm0 = vcmp.eq.s32.totalorder %v2040_v6, %v126_v45  ;;  %1654 = vmatprep.mubr.msk.bf16.mxu0 %vm530_vm4, %v472_v43 }
  0x9f   :  { %v1445_v46 = vsel %vm289_vm15, 1.0, %v1812_v12  ;;  %v1444_v47 = vsel %vm288_vm0, 1.0, %v1812_v12 }
  0xa0   :  { %v473_v48 = vpack.c.bf16 %v1445_v46, %v1444_v47 }
  0xa1   :  { %v135_v49 = vpop.permute.xlu1 %134  ;;  %v132_v50 = vpop.permute.xlu0 %131 }
  0xa2   :  { %vm291_vm1 = vcmp.eq.s32.totalorder %v2040_v6, %v135_v49  ;;  %vm290_vm2 = vcmp.eq.s32.totalorder %v2040_v6, %v132_v50 }
  0xa3   :  { %v1447_v51 = vsel %vm291_vm1, 1.0, %v1812_v12  ;;  %v1446_v52 = vsel %vm290_vm2, 1.0, %v1812_v12  ;;  %1655 = vmatmul.mubr.msk.bf16.gmra.mrb[12].mxu0 %vm530_vm4, %v473_v48 }
  0xa4   :  { %v474_v53 = vpack.c.bf16 %v1447_v51, %v1446_v52 }
  0xa5   :  { %v141_v54 = vpop.permute.xlu1 %140  ;;  %v138_v55 = vpop.permute.xlu0 %137 }
  0xa6   :  { %vm293_vm3 = vcmp.eq.s32.totalorder %v2040_v6, %v141_v54  ;;  %vm292_vm5 = vcmp.eq.s32.totalorder %v2040_v6, %v138_v55  ;;  %1658 = vmatprep.mubr.msk.bf16.mxu0 %vm530_vm4, %v474_v53 }
  0xa7   :  { %v1449_v56 = vsel %vm293_vm3, 1.0, %v1812_v12  ;;  %v1448_v57 = vsel %vm292_vm5, 1.0, %v1812_v12 }
  0xa8   :  { %v475_v58 = vpack.c.bf16 %v1449_v56, %v1448_v57 }
  0xa9   :  { %v147_v59 = vpop.permute.xlu1 %146  ;;  %v144_v60 = vpop.permute.xlu0 %143 }
  0xaa   :  { %vm295_vm6 = vcmp.eq.s32.totalorder %v2040_v6, %v147_v59  ;;  %vm294_vm7 = vcmp.eq.s32.totalorder %v2040_v6, %v144_v60 }
  0xab   :  { %v1451_v61 = vsel %vm295_vm6, 1.0, %v1812_v12  ;;  %v1450_v62 = vsel %vm294_vm7, 1.0, %v1812_v12  ;;  %1659 = vmatmul.mubr.msk.bf16.gmra.mrb[16].mxu0 %vm530_vm4, %v475_v58 }
  0xac   :  { %v476_v63 = vpack.c.bf16 %v1451_v61, %v1450_v62 }
  0xad   :  { %v153_v0 = vpop.permute.xlu1 %152  ;;  %v150_v1 = vpop.permute.xlu0 %149 }
  0xae   :  { %vm297_vm8 = vcmp.eq.s32.totalorder %v2040_v6, %v153_v0  ;;  %vm296_vm9 = vcmp.eq.s32.totalorder %v2040_v6, %v150_v1  ;;  %1662 = vmatprep.mubr.msk.bf16.mxu0 %vm530_vm4, %v476_v63 }
  0xaf   :  { %v1453_v2 = vsel %vm297_vm8, 1.0, %v1812_v12  ;;  %v1452_v3 = vsel %vm296_vm9, 1.0, %v1812_v12 }
  0xb0   :  { %v477_v4 = vpack.c.bf16 %v1453_v2, %v1452_v3  ;;  %v1786_v2 = vld [vmem:[%s2254_s2 + $0x8] sm:$0xff]   ;;  %s1813_s2 = smov [#allocation2]  }
  0xb1   :  { %v159_v5 = vpop.permute.xlu1 %158  ;;  %v156_v7 = vpop.permute.xlu0 %155  ;;  %1708 = vmatprep.subr.bf16.mxu1 %v1786_v2  ;;  %s1419_s12 = sshll.u32 %s1813_s2, 4  ;;  %s1420_s12 = int_to_ptr.vmem [resolvable:$true] %s1419_s12 }
  0xb2   :  { %vm299_vm10 = vcmp.eq.s32.totalorder %v2040_v6, %v159_v5  ;;  %vm298_vm11 = vcmp.eq.s32.totalorder %v2040_v6, %v156_v7  ;;  %1709 = vmatpush3.bf16.msra.mxu1 %v1786_v2  ;;  %s1787_s13 = scalar_lea.vmem %s1420_s12, 8192  ;;  %p1792_p1 = scmp.lt.s32.totalorder %s1420_s12, %s1420_s12 }
  0xb3   :  { %v1455_v8 = vsel %vm299_vm10, 1.0, %v1812_v12  ;;  %v1454_v9 = vsel %vm298_vm11, 1.0, %v1812_v12  ;;  %1663 = vmatmul.mubr.msk.bf16.gmra.mrb[20].mxu0 %vm530_vm4, %v477_v4  ;;  %p1788_p0 = scmp.ne.s32.totalorder %s1420_s12, %s1787_s13  ;;  %p1793_p2 = scmp.lt.s32.totalorder %s1787_s13, %s1787_s13 }
  0xb4   :  { %v478_v10 = vpack.c.bf16 %v1455_v8, %v1454_v9 }
  0xb5   :  { %v165_v11 = vpop.permute.xlu1 %164  ;;  %v162_v13 = vpop.permute.xlu0 %161  ;;  %p1794_p3 = por %p1793_p2, %p1792_p1 }
  0xb6   :  { %vm301_vm12 = vcmp.eq.s32.totalorder %v2040_v6, %v165_v11  ;;  %vm300_vm13 = vcmp.eq.s32.totalorder %v2040_v6, %v162_v13  ;;  %1666 = vmatprep.mubr.msk.bf16.mxu0 %vm530_vm4, %v478_v10 }
  0xb7   :  { %v1457_v14 = vsel %vm301_vm12, 1.0, %v1812_v12  ;;  %v1456_v15 = vsel %vm300_vm13, 1.0, %v1812_v12  ;;  %p1795_p4 = pnand %p1794_p3, %p1788_p0 }
  0xb8   :  { %v479_v16 = vpack.c.bf16 %v1457_v14, %v1456_v15 }
  0xb9   :  { %v171_v17 = vpop.permute.xlu1 %170  ;;  %v168_v18 = vpop.permute.xlu0 %167 }
  0xba   :  { %vm303_vm14 = vcmp.eq.s32.totalorder %v2040_v6, %v171_v17  ;;  %vm302_vm15 = vcmp.eq.s32.totalorder %v2040_v6, %v168_v18 }
  0xbb   :  { %v1459_v19 = vsel %vm303_vm14, 1.0, %v1812_v12  ;;  %v1458_v20 = vsel %vm302_vm15, 1.0, %v1812_v12  ;;  %1667 = vmatmul.mubr.msk.bf16.gmra.mrb[24].mxu0 %vm530_vm4, %v479_v16 }
  0xbc   :  { %v480_v21 = vpack.c.bf16 %v1459_v19, %v1458_v20 }
  0xbd   :  { %v177_v22 = vpop.permute.xlu1 %176  ;;  %v174_v23 = vpop.permute.xlu0 %173 }
  0xbe   :  { %vm305_vm0 = vcmp.eq.s32.totalorder %v2040_v6, %v177_v22  ;;  %vm304_vm1 = vcmp.eq.s32.totalorder %v2040_v6, %v174_v23  ;;  %1670 = vmatprep.mubr.msk.bf16.mxu0 %vm530_vm4, %v480_v21 }
  0xbf   :  { %v1461_v24 = vsel %vm305_vm0, 1.0, %v1812_v12  ;;  %v1460_v25 = vsel %vm304_vm1, 1.0, %v1812_v12 }
  0xc0   :  { %v481_v26 = vpack.c.bf16 %v1461_v24, %v1460_v25 }
  0xc1   :  { %v183_v27 = vpop.permute.xlu1 %182  ;;  %v180_v28 = vpop.permute.xlu0 %179 }
  0xc2   :  { %vm307_vm2 = vcmp.eq.s32.totalorder %v2040_v6, %v183_v27  ;;  %vm306_vm3 = vcmp.eq.s32.totalorder %v2040_v6, %v180_v28 }
  0xc3   :  { %v1463_v29 = vsel %vm307_vm2, 1.0, %v1812_v12  ;;  %v1462_v30 = vsel %vm306_vm3, 1.0, %v1812_v12  ;;  %1671 = vmatmul.mubr.msk.bf16.gmra.mrb[28].mxu0 %vm530_vm4, %v481_v26 }
  0xc4   :  { %v482_v31 = vpack.c.bf16 %v1463_v29, %v1462_v30 }
  0xc5   :  { %v189_v32 = vpop.permute.xlu1 %188  ;;  %v186_v33 = vpop.permute.xlu0 %185 }
  0xc6   :  { %vm309_vm5 = vcmp.eq.s32.totalorder %v2040_v6, %v189_v32  ;;  %vm308_vm6 = vcmp.eq.s32.totalorder %v2040_v6, %v186_v33  ;;  %1674 = vmatprep.mubr.msk.bf16.mxu0 %vm530_vm4, %v482_v31 }
  0xc7   :  { %v1465_v34 = vsel %vm309_vm5, 1.0, %v1812_v12  ;;  %v1464_v35 = vsel %vm308_vm6, 1.0, %v1812_v12 }
  0xc8   :  { %v483_v36 = vpack.c.bf16 %v1465_v34, %v1464_v35 }
  0xc9   :  { %v195_v37 = vpop.permute.xlu1 %194  ;;  %v192_v38 = vpop.permute.xlu0 %191 }
  0xca   :  { %vm311_vm7 = vcmp.eq.s32.totalorder %v2040_v6, %v195_v37  ;;  %vm310_vm8 = vcmp.eq.s32.totalorder %v2040_v6, %v192_v38 }
  0xcb   :  { %v1467_v39 = vsel %vm311_vm7, 1.0, %v1812_v12  ;;  %v1466_v40 = vsel %vm310_vm8, 1.0, %v1812_v12  ;;  %1675 = vmatmul.mubr.msk.bf16.gmra.mrb[32].mxu0 %vm530_vm4, %v483_v36 }
  0xcc   :  { %v484_v41 = vpack.c.bf16 %v1467_v39, %v1466_v40 }
  0xcd   :  { %v201_v42 = vpop.permute.xlu1 %200  ;;  %v198_v43 = vpop.permute.xlu0 %197 }
  0xce   :  { %vm313_vm9 = vcmp.eq.s32.totalorder %v2040_v6, %v201_v42  ;;  %vm312_vm10 = vcmp.eq.s32.totalorder %v2040_v6, %v198_v43  ;;  %1678 = vmatprep.mubr.msk.bf16.mxu0 %vm530_vm4, %v484_v41 }
  0xcf   :  { %v1469_v44 = vsel %vm313_vm9, 1.0, %v1812_v12  ;;  %v1468_v45 = vsel %vm312_vm10, 1.0, %v1812_v12 }
  0xd0   :  { %v485_v46 = vpack.c.bf16 %v1469_v44, %v1468_v45 }
  0xd1   :  { %v207_v47 = vpop.permute.xlu1 %206  ;;  %v204_v48 = vpop.permute.xlu0 %203 }
  0xd2   :  { %vm315_vm11 = vcmp.eq.s32.totalorder %v2040_v6, %v207_v47  ;;  %vm314_vm12 = vcmp.eq.s32.totalorder %v2040_v6, %v204_v48 }
  0xd3   :  { %v1471_v49 = vsel %vm315_vm11, 1.0, %v1812_v12  ;;  %v1470_v50 = vsel %vm314_vm12, 1.0, %v1812_v12  ;;  %1679 = vmatmul.mubr.msk.bf16.gmra.mrb[36].mxu0 %vm530_vm4, %v485_v46 }
  0xd4   :  { %v486_v51 = vpack.c.bf16 %v1471_v49, %v1470_v50 }
  0xd5   :  { %v213_v52 = vpop.permute.xlu1 %212  ;;  %v210_v53 = vpop.permute.xlu0 %209 }
  0xd6   :  { %vm317_vm13 = vcmp.eq.s32.totalorder %v2040_v6, %v213_v52  ;;  %vm316_vm14 = vcmp.eq.s32.totalorder %v2040_v6, %v210_v53  ;;  %1682 = vmatprep.mubr.msk.bf16.mxu0 %vm530_vm4, %v486_v51 }
  0xd7   :  { %v1473_v54 = vsel %vm317_vm13, 1.0, %v1812_v12  ;;  %v1472_v55 = vsel %vm316_vm14, 1.0, %v1812_v12 }
  0xd8   :  { %v487_v56 = vpack.c.bf16 %v1473_v54, %v1472_v55 }
  0xd9   :  { %v219_v57 = vpop.permute.xlu1 %218  ;;  %v216_v58 = vpop.permute.xlu0 %215 }
  0xda   :  { %vm319_vm15 = vcmp.eq.s32.totalorder %v2040_v6, %v219_v57  ;;  %vm318_vm0 = vcmp.eq.s32.totalorder %v2040_v6, %v216_v58 }
  0xdb   :  { %v1475_v59 = vsel %vm319_vm15, 1.0, %v1812_v12  ;;  %v1474_v60 = vsel %vm318_vm0, 1.0, %v1812_v12  ;;  %1683 = vmatmul.mubr.msk.bf16.gmra.mrb[40].mxu0 %vm530_vm4, %v487_v56 }
  0xdc   :  { %v488_v61 = vpack.c.bf16 %v1475_v59, %v1474_v60 }
  0xdd   :  { %v225_v62 = vpop.permute.xlu1 %224  ;;  %v222_v63 = vpop.permute.xlu0 %221 }
  0xde   :  { %vm321_vm1 = vcmp.eq.s32.totalorder %v2040_v6, %v225_v62  ;;  %vm320_vm2 = vcmp.eq.s32.totalorder %v2040_v6, %v222_v63  ;;  %1686 = vmatprep.mubr.msk.bf16.mxu0 %vm530_vm4, %v488_v61 }
  0xdf   :  { %v1477_v0 = vsel %vm321_vm1, 1.0, %v1812_v12  ;;  %v1476_v1 = vsel %vm320_vm2, 1.0, %v1812_v12 }
  0xe0   :  { %v489_v3 = vpack.c.bf16 %v1477_v0, %v1476_v1 }
  0xe1   :  { %v231_v4 = vpop.permute.xlu1 %230  ;;  %v228_v5 = vpop.permute.xlu0 %227 }
  0xe2   :  { %vm323_vm3 = vcmp.eq.s32.totalorder %v2040_v6, %v231_v4  ;;  %vm322_vm5 = vcmp.eq.s32.totalorder %v2040_v6, %v228_v5 }
  0xe3   :  { %v1479_v7 = vsel %vm323_vm3, 1.0, %v1812_v12  ;;  %v1478_v8 = vsel %vm322_vm5, 1.0, %v1812_v12  ;;  %1687 = vmatmul.mubr.msk.bf16.gmra.mrb[44].mxu0 %vm530_vm4, %v489_v3  ;;  %vm964_vm5 = vcmask 261120  }
  0xe4   :  { %v490_v9 = vpack.c.bf16 %v1479_v7, %v1478_v8 }
  0xe5   :  { %v237_v10 = vpop.permute.xlu1 %236  ;;  %v234_v11 = vpop.permute.xlu0 %233 }
  0xe6   :  { %vm325_vm6 = vcmp.eq.s32.totalorder %v2040_v6, %v237_v10  ;;  %vm324_vm7 = vcmp.eq.s32.totalorder %v2040_v6, %v234_v11  ;;  %1690 = vmatprep.mubr.msk.bf16.mxu0 %vm530_vm4, %v490_v9 }
  0xe7   :  { %v1481_v13 = vsel %vm325_vm6, 1.0, %v1812_v12  ;;  %v1480_v14 = vsel %vm324_vm7, 1.0, %v1812_v12 }
  0xe8   :  { %v491_v15 = vpack.c.bf16 %v1481_v13, %v1480_v14 }
  0xe9   :  { %v243_v16 = vpop.permute.xlu1 %242  ;;  %v240_v17 = vpop.permute.xlu0 %239 }
  0xea   :  { %vm327_vm8 = vcmp.eq.s32.totalorder %v2040_v6, %v243_v16  ;;  %vm326_vm9 = vcmp.eq.s32.totalorder %v2040_v6, %v240_v17 }
  0xeb   :  { %v1483_v18 = vsel %vm327_vm8, 1.0, %v1812_v12  ;;  %v1482_v19 = vsel %vm326_vm9, 1.0, %v1812_v12  ;;  %1691 = vmatmul.mubr.msk.bf16.gmra.mrb[48].mxu0 %vm530_vm4, %v491_v15 }
  0xec   :  { %v492_v20 = vpack.c.bf16 %v1483_v18, %v1482_v19 }
  0xed   :  { %v249_v21 = vpop.permute.xlu1 %248  ;;  %v246_v22 = vpop.permute.xlu0 %245 }
  0xee   :  { %vm329_vm10 = vcmp.eq.s32.totalorder %v2040_v6, %v249_v21  ;;  %vm328_vm11 = vcmp.eq.s32.totalorder %v2040_v6, %v246_v22  ;;  %1694 = vmatprep.mubr.msk.bf16.mxu0 %vm530_vm4, %v492_v20 }
  0xef   :  { %v1485_v23 = vsel %vm329_vm10, 1.0, %v1812_v12  ;;  %v1484_v24 = vsel %vm328_vm11, 1.0, %v1812_v12 }
  0xf0   :  { %v493_v25 = vpack.c.bf16 %v1485_v23, %v1484_v24 }
  0xf1   :  { %v255_v26 = vpop.permute.xlu1 %254  ;;  %v252_v27 = vpop.permute.xlu0 %251 }
  0xf2   :  { %vm331_vm12 = vcmp.eq.s32.totalorder %v2040_v6, %v255_v26  ;;  %vm330_vm13 = vcmp.eq.s32.totalorder %v2040_v6, %v252_v27 }
  0xf3   :  { %v1487_v28 = vsel %vm331_vm12, 1.0, %v1812_v12  ;;  %v1486_v29 = vsel %vm330_vm13, 1.0, %v1812_v12  ;;  %1695 = vmatmul.mubr.msk.bf16.gmra.mrb[52].mxu0 %vm530_vm4, %v493_v25 }
  0xf4   :  { %v494_v30 = vpack.c.bf16 %v1487_v28, %v1486_v29 }
  0xf5   :  { %v261_v31 = vpop.permute.xlu1 %260  ;;  %v258_v32 = vpop.permute.xlu0 %257 }
  0xf6   :  { %vm333_vm14 = vcmp.eq.s32.totalorder %v2040_v6, %v261_v31  ;;  %vm332_vm15 = vcmp.eq.s32.totalorder %v2040_v6, %v258_v32  ;;  %1698 = vmatprep.mubr.msk.bf16.mxu0 %vm530_vm4, %v494_v30 }
  0xf7   :  { %v1489_v33 = vsel %vm333_vm14, 1.0, %v1812_v12  ;;  %v1488_v34 = vsel %vm332_vm15, 1.0, %v1812_v12 }
  0xf8   :  { %v495_v35 = vpack.c.bf16 %v1489_v33, %v1488_v34 }
  0xf9   :  { %v267_v36 = vpop.permute.xlu1 %266  ;;  %v264_v37 = vpop.permute.xlu0 %263 }
  0xfa   :  { %vm335_vm0 = vcmp.eq.s32.totalorder %v2040_v6, %v267_v36  ;;  %vm334_vm1 = vcmp.eq.s32.totalorder %v2040_v6, %v264_v37 }
  0xfb   :  { %v1491_v38 = vsel %vm335_vm0, 1.0, %v1812_v12  ;;  %v1490_v39 = vsel %vm334_vm1, 1.0, %v1812_v12  ;;  %1699 = vmatmul.mubr.msk.bf16.gmra.mrb[56].mxu0 %vm530_vm4, %v495_v35 }
  0xfc   :  { %v496_v40 = vpack.c.bf16 %v1491_v38, %v1490_v39 }
  0xfd   :  { %v273_v41 = vpop.permute.xlu1 %272  ;;  %v270_v42 = vpop.permute.xlu0 %269 }
  0xfe   :  { %vm337_vm2 = vcmp.eq.s32.totalorder %v2040_v6, %v273_v41  ;;  %vm336_vm3 = vcmp.eq.s32.totalorder %v2040_v6, %v270_v42  ;;  %1702 = vmatprep.mubr.msk.bf16.mxu0 %vm530_vm4, %v496_v40 }
  0xff   :  { %v1493_v43 = vsel %vm337_vm2, 1.0, %v1812_v12  ;;  %v1492_v44 = vsel %vm336_vm3, 1.0, %v1812_v12 }
 0x100   :  { %v497_v45 = vpack.c.bf16 %v1493_v43, %v1492_v44 }
 0x103   :  { %1703 = vmatmul.mubr.msk.bf16.gmra.mrb[60].mxu0 %vm530_vm4, %v497_v45 }
 0x15e   :  { %v1644_v46 = vpop.f32.mrb[0].mxu0 }
 0x15f   :  { %v661_v47 = vpop.f32.mrb[1].mxu0 }
 0x160   :  { %v1645_v48 = vpop.f32.mrb[2].mxu0 }
 0x161   :  { %v917_v49 = vpack.c.bf16 %v1645_v48, %v1644_v46  ;;  %v664_v50 = vpop.f32.mrb[3].mxu0 }
 0x162   :  { %v916_v51 = vpack.c.bf16 %v664_v50, %v661_v47 }
 0x164   :  { %1710 = vmatprep.mubr.msk.bf16.mxu1 %vm964_vm5, %v916_v51 }
 0x165   :  { %1711 = vmatmul.mubr.msk.bf16.vlgmr.msra.gmra.mrb[0].mxu1 %vm964_vm5, %v917_v49 }
 0x166   :  { %v1648_v6 = vpop.f32.mrb[4].mxu0 }
 0x167   :  { %v677_v52 = vpop.f32.mrb[5].mxu0 }
 0x168   :  { %v1649_v53 = vpop.f32.mrb[6].mxu0 }
 0x169   :  { %v919_v54 = vpack.c.bf16 %v1649_v53, %v1648_v6  ;;  %v680_v55 = vpop.f32.mrb[7].mxu0 }
 0x16a   :  { %v918_v12 = vpack.c.bf16 %v680_v55, %v677_v52 }
 0x16c   :  { %1714 = vmatprep.mubr.msk.bf16.mxu1 %vm964_vm5, %v918_v12 }
 0x16d   :  { %1715 = vmatmul.mubr.msk.bf16.gmra.mrb[4].mxu1 %vm964_vm5, %v919_v54 }
 0x16e   :  { %v1652_v56 = vpop.f32.mrb[8].mxu0 }
 0x16f   :  { %v693_v57 = vpop.f32.mrb[9].mxu0 }
 0x170   :  { %v1653_v58 = vpop.f32.mrb[10].mxu0 }
 0x171   :  { %v921_v59 = vpack.c.bf16 %v1653_v58, %v1652_v56  ;;  %v696_v60 = vpop.f32.mrb[11].mxu0 }
 0x172   :  { %v920_v61 = vpack.c.bf16 %v696_v60, %v693_v57 }
 0x174   :  { %1718 = vmatprep.mubr.msk.bf16.mxu1 %vm964_vm5, %v920_v61 }
 0x175   :  { %1719 = vmatmul.mubr.msk.bf16.gmra.mrb[8].mxu1 %vm964_vm5, %v921_v59 }
 0x176   :  { %v1656_v62 = vpop.f32.mrb[12].mxu0 }
 0x177   :  { %v709_v63 = vpop.f32.mrb[13].mxu0 }
 0x178   :  { %v1657_v0 = vpop.f32.mrb[14].mxu0 }
 0x179   :  { %v923_v1 = vpack.c.bf16 %v1657_v0, %v1656_v62  ;;  %v712_v2 = vpop.f32.mrb[15].mxu0 }
 0x17a   :  { %v922_v3 = vpack.c.bf16 %v712_v2, %v709_v63 }
 0x17c   :  { %1722 = vmatprep.mubr.msk.bf16.mxu1 %vm964_vm5, %v922_v3 }
 0x17d   :  { %1723 = vmatmul.mubr.msk.bf16.gmra.mrb[12].mxu1 %vm964_vm5, %v923_v1 }
 0x17e   :  { %v1660_v4 = vpop.f32.mrb[16].mxu0 }
 0x17f   :  { %v725_v5 = vpop.f32.mrb[17].mxu0 }
 0x180   :  { %v1661_v7 = vpop.f32.mrb[18].mxu0 }
 0x181   :  { %v925_v8 = vpack.c.bf16 %v1661_v7, %v1660_v4  ;;  %v728_v9 = vpop.f32.mrb[19].mxu0 }
 0x182   :  { %v924_v10 = vpack.c.bf16 %v728_v9, %v725_v5 }
 0x184   :  { %1726 = vmatprep.mubr.msk.bf16.mxu1 %vm964_vm5, %v924_v10 }
 0x185   :  { %1727 = vmatmul.mubr.msk.bf16.gmra.mrb[16].mxu1 %vm964_vm5, %v925_v8 }
 0x186   :  { %v1664_v11 = vpop.f32.mrb[20].mxu0 }
 0x187   :  { %v741_v13 = vpop.f32.mrb[21].mxu0 }
 0x188   :  { %v1665_v14 = vpop.f32.mrb[22].mxu0 }
 0x189   :  { %v927_v15 = vpack.c.bf16 %v1665_v14, %v1664_v11  ;;  %v744_v16 = vpop.f32.mrb[23].mxu0 }
 0x18a   :  { %v926_v17 = vpack.c.bf16 %v744_v16, %v741_v13 }
 0x18c   :  { %1730 = vmatprep.mubr.msk.bf16.mxu1 %vm964_vm5, %v926_v17 }
 0x18d   :  { %1731 = vmatmul.mubr.msk.bf16.gmra.mrb[20].mxu1 %vm964_vm5, %v927_v15 }
 0x18e   :  { %v1668_v18 = vpop.f32.mrb[24].mxu0 }
 0x18f   :  { %v757_v19 = vpop.f32.mrb[25].mxu0 }
 0x190   :  { %v1669_v20 = vpop.f32.mrb[26].mxu0 }
 0x191   :  { %v929_v21 = vpack.c.bf16 %v1669_v20, %v1668_v18  ;;  %v760_v22 = vpop.f32.mrb[27].mxu0 }
 0x192   :  { %v928_v23 = vpack.c.bf16 %v760_v22, %v757_v19 }
 0x194   :  { %1734 = vmatprep.mubr.msk.bf16.mxu1 %vm964_vm5, %v928_v23 }
 0x195   :  { %1735 = vmatmul.mubr.msk.bf16.gmra.mrb[24].mxu1 %vm964_vm5, %v929_v21 }
 0x196   :  { %v1672_v24 = vpop.f32.mrb[28].mxu0 }
 0x197   :  { %v773_v25 = vpop.f32.mrb[29].mxu0 }
 0x198   :  { %v1673_v26 = vpop.f32.mrb[30].mxu0 }
 0x199   :  { %v931_v27 = vpack.c.bf16 %v1673_v26, %v1672_v24  ;;  %v776_v28 = vpop.f32.mrb[31].mxu0 }
 0x19a   :  { %v930_v29 = vpack.c.bf16 %v776_v28, %v773_v25 }
 0x19c   :  { %1738 = vmatprep.mubr.msk.bf16.mxu1 %vm964_vm5, %v930_v29 }
 0x19d   :  { %1739 = vmatmul.mubr.msk.bf16.gmra.mrb[28].mxu1 %vm964_vm5, %v931_v27 }
 0x19e   :  { %v1676_v30 = vpop.f32.mrb[32].mxu0 }
 0x19f   :  { %v789_v31 = vpop.f32.mrb[33].mxu0 }
 0x1a0   :  { %v1677_v32 = vpop.f32.mrb[34].mxu0 }
 0x1a1   :  { %v933_v33 = vpack.c.bf16 %v1677_v32, %v1676_v30  ;;  %v792_v34 = vpop.f32.mrb[35].mxu0 }
 0x1a2   :  { %v932_v35 = vpack.c.bf16 %v792_v34, %v789_v31 }
 0x1a4   :  { %1742 = vmatprep.mubr.msk.bf16.mxu1 %vm964_vm5, %v932_v35 }
 0x1a5   :  { %1743 = vmatmul.mubr.msk.bf16.gmra.mrb[32].mxu1 %vm964_vm5, %v933_v33 }
 0x1a6   :  { %v1680_v36 = vpop.f32.mrb[36].mxu0 }
 0x1a7   :  { %v805_v37 = vpop.f32.mrb[37].mxu0 }
 0x1a8   :  { %v1681_v38 = vpop.f32.mrb[38].mxu0 }
 0x1a9   :  { %v935_v39 = vpack.c.bf16 %v1681_v38, %v1680_v36  ;;  %v808_v40 = vpop.f32.mrb[39].mxu0 }
 0x1aa   :  { %v934_v41 = vpack.c.bf16 %v808_v40, %v805_v37 }
 0x1ac   :  { %1746 = vmatprep.mubr.msk.bf16.mxu1 %vm964_vm5, %v934_v41 }
 0x1ad   :  { %1747 = vmatmul.mubr.msk.bf16.gmra.mrb[36].mxu1 %vm964_vm5, %v935_v39 }
 0x1ae   :  { %v1684_v42 = vpop.f32.mrb[40].mxu0 }
 0x1af   :  { %v821_v43 = vpop.f32.mrb[41].mxu0 }
 0x1b0   :  { %v1685_v44 = vpop.f32.mrb[42].mxu0 }
 0x1b1   :  { %v937_v45 = vpack.c.bf16 %v1685_v44, %v1684_v42  ;;  %v824_v46 = vpop.f32.mrb[43].mxu0 }
 0x1b2   :  { %v936_v47 = vpack.c.bf16 %v824_v46, %v821_v43 }
 0x1b4   :  { %1750 = vmatprep.mubr.msk.bf16.mxu1 %vm964_vm5, %v936_v47 }
 0x1b5   :  { %1751 = vmatmul.mubr.msk.bf16.gmra.mrb[40].mxu1 %vm964_vm5, %v937_v45 }
 0x1b6   :  { %v1688_v48 = vpop.f32.mrb[44].mxu0 }
 0x1b7   :  { %v837_v49 = vpop.f32.mrb[45].mxu0 }
 0x1b8   :  { %v1689_v50 = vpop.f32.mrb[46].mxu0 }
 0x1b9   :  { %v939_v51 = vpack.c.bf16 %v1689_v50, %v1688_v48  ;;  %v840_v6 = vpop.f32.mrb[47].mxu0 }
 0x1ba   :  { %v938_v52 = vpack.c.bf16 %v840_v6, %v837_v49 }
 0x1bc   :  { %1754 = vmatprep.mubr.msk.bf16.mxu1 %vm964_vm5, %v938_v52 }
 0x1bd   :  { %1755 = vmatmul.mubr.msk.bf16.gmra.mrb[44].mxu1 %vm964_vm5, %v939_v51 }
 0x1be   :  { %v1692_v53 = vpop.f32.mrb[48].mxu0 }
 0x1bf   :  { %v853_v54 = vpop.f32.mrb[49].mxu0 }
 0x1c0   :  { %v1693_v55 = vpop.f32.mrb[50].mxu0 }
 0x1c1   :  { %v941_v12 = vpack.c.bf16 %v1693_v55, %v1692_v53  ;;  %v856_v56 = vpop.f32.mrb[51].mxu0 }
 0x1c2   :  { %v940_v57 = vpack.c.bf16 %v856_v56, %v853_v54 }
 0x1c4   :  { %1758 = vmatprep.mubr.msk.bf16.mxu1 %vm964_vm5, %v940_v57 }
 0x1c5   :  { %1759 = vmatmul.mubr.msk.bf16.gmra.mrb[48].mxu1 %vm964_vm5, %v941_v12 }
 0x1c6   :  { %v1696_v58 = vpop.f32.mrb[52].mxu0 }
 0x1c7   :  { %v869_v59 = vpop.f32.mrb[53].mxu0 }
 0x1c8   :  { %v1697_v60 = vpop.f32.mrb[54].mxu0 }
 0x1c9   :  { %v943_v61 = vpack.c.bf16 %v1697_v60, %v1696_v58  ;;  %v872_v62 = vpop.f32.mrb[55].mxu0 }
 0x1ca   :  { %v942_v63 = vpack.c.bf16 %v872_v62, %v869_v59 }
 0x1cc   :  { %1762 = vmatprep.mubr.msk.bf16.mxu1 %vm964_vm5, %v942_v63 }
 0x1cd   :  { %1763 = vmatmul.mubr.msk.bf16.gmra.mrb[52].mxu1 %vm964_vm5, %v943_v61 }
 0x1ce   :  { %v1700_v0 = vpop.f32.mrb[56].mxu0 }
 0x1cf   :  { %v885_v1 = vpop.f32.mrb[57].mxu0 }
 0x1d0   :  { %v1701_v2 = vpop.f32.mrb[58].mxu0 }
 0x1d1   :  { %v945_v3 = vpack.c.bf16 %v1701_v2, %v1700_v0  ;;  %v888_v4 = vpop.f32.mrb[59].mxu0 }
 0x1d2   :  { %v944_v5 = vpack.c.bf16 %v888_v4, %v885_v1 }
 0x1d4   :  { %1766 = vmatprep.mubr.msk.bf16.mxu1 %vm964_vm5, %v944_v5 }
 0x1d5   :  { %1767 = vmatmul.mubr.msk.bf16.gmra.mrb[56].mxu1 %vm964_vm5, %v945_v3 }
 0x1d6   :  { %v1704_v7 = vpop.f32.mrb[60].mxu0 }
 0x1d7   :  { %v901_v8 = vpop.f32.mrb[61].mxu0 }
 0x1d8   :  { %v1705_v9 = vpop.f32.mrb[62].mxu0 }
 0x1d9   :  { %v947_v10 = vpack.c.bf16 %v1705_v9, %v1704_v7  ;;  %v904_v11 = vpop.f32.mrb[63].mxu0 }
 0x1da   :  { %v946_v13 = vpack.c.bf16 %v904_v11, %v901_v8 }
 0x1dc   :  { %1770 = vmatprep.mubr.msk.bf16.mxu1 %vm964_vm5, %v946_v13 }
 0x1dd   :  { %1771 = vmatmul.mubr.msk.bf16.gmra.mrb[60].mxu1 %vm964_vm5, %v947_v10 }
 0x238   :  { %v1712_v14 = vpop.f32.mrb[0].mxu1 }
 0x239   :  { %1352 = vst [vmem:[#allocation2 + $0x10] sm:$0xff] %v1712_v14  ;;  %v1095_v15 = vpop.f32.mrb[1].mxu1 }
 0x23a   :  { %1350 = vst [vmem:[#allocation2] sm:$0xff] %v1095_v15  ;;  %v1713_v16 = vpop.f32.mrb[2].mxu1 }
 0x23b   :  { %1353 = vst [vmem:[#allocation2 + $0x18] sm:$0xff] %v1713_v16  ;;  %v1098_v17 = vpop.f32.mrb[3].mxu1 }
 0x23c   :  { %1351 = vst [vmem:[#allocation2 + $0x8] sm:$0xff] %v1098_v17 }
 0x240   :  { %v1716_v18 = vpop.f32.mrb[4].mxu1 }
 0x241   :  { %1356 = vst [vmem:[#allocation2 + $0x30] sm:$0xff] %v1716_v18  ;;  %v1111_v19 = vpop.f32.mrb[5].mxu1 }
 0x242   :  { %1354 = vst [vmem:[#allocation2 + $0x20] sm:$0xff] %v1111_v19  ;;  %v1717_v20 = vpop.f32.mrb[6].mxu1 }
 0x243   :  { %1357 = vst [vmem:[#allocation2 + $0x38] sm:$0xff] %v1717_v20  ;;  %v1114_v21 = vpop.f32.mrb[7].mxu1 }
 0x244   :  { %1355 = vst [vmem:[#allocation2 + $0x28] sm:$0xff] %v1114_v21 }
 0x248   :  { %v1720_v22 = vpop.f32.mrb[8].mxu1 }
 0x249   :  { %1360 = vst [vmem:[#allocation2 + $0x50] sm:$0xff] %v1720_v22  ;;  %v1127_v23 = vpop.f32.mrb[9].mxu1 }
 0x24a   :  { %1358 = vst [vmem:[#allocation2 + $0x40] sm:$0xff] %v1127_v23  ;;  %v1721_v24 = vpop.f32.mrb[10].mxu1 }
 0x24b   :  { %1361 = vst [vmem:[#allocation2 + $0x58] sm:$0xff] %v1721_v24  ;;  %v1130_v25 = vpop.f32.mrb[11].mxu1 }
 0x24c   :  { %1359 = vst [vmem:[#allocation2 + $0x48] sm:$0xff] %v1130_v25 }
 0x250   :  { %v1724_v26 = vpop.f32.mrb[12].mxu1 }
 0x251   :  { %1364 = vst [vmem:[#allocation2 + $0x70] sm:$0xff] %v1724_v26  ;;  %v1143_v27 = vpop.f32.mrb[13].mxu1 }
 0x252   :  { %1362 = vst [vmem:[#allocation2 + $0x60] sm:$0xff] %v1143_v27  ;;  %v1725_v28 = vpop.f32.mrb[14].mxu1 }
 0x253   :  { %1365 = vst [vmem:[#allocation2 + $0x78] sm:$0xff] %v1725_v28  ;;  %v1146_v29 = vpop.f32.mrb[15].mxu1 }
 0x254   :  { %1363 = vst [vmem:[#allocation2 + $0x68] sm:$0xff] %v1146_v29 }
 0x258   :  { %v1728_v30 = vpop.f32.mrb[16].mxu1 }
 0x259   :  { %1368 = vst [vmem:[#allocation2 + $0x90] sm:$0xff] %v1728_v30  ;;  %v1159_v31 = vpop.f32.mrb[17].mxu1 }
 0x25a   :  { %1366 = vst [vmem:[#allocation2 + $0x80] sm:$0xff] %v1159_v31  ;;  %v1729_v32 = vpop.f32.mrb[18].mxu1 }
 0x25b   :  { %1369 = vst [vmem:[#allocation2 + $0x98] sm:$0xff] %v1729_v32  ;;  %v1162_v33 = vpop.f32.mrb[19].mxu1 }
 0x25c   :  { %1367 = vst [vmem:[#allocation2 + $0x88] sm:$0xff] %v1162_v33 }
 0x260   :  { %v1732_v34 = vpop.f32.mrb[20].mxu1 }
 0x261   :  { %1372 = vst [vmem:[#allocation2 + $0xb0] sm:$0xff] %v1732_v34  ;;  %v1175_v35 = vpop.f32.mrb[21].mxu1 }
 0x262   :  { %1370 = vst [vmem:[#allocation2 + $0xa0] sm:$0xff] %v1175_v35  ;;  %v1733_v36 = vpop.f32.mrb[22].mxu1 }
 0x263   :  { %1373 = vst [vmem:[#allocation2 + $0xb8] sm:$0xff] %v1733_v36  ;;  %v1178_v37 = vpop.f32.mrb[23].mxu1 }
 0x264   :  { %1371 = vst [vmem:[#allocation2 + $0xa8] sm:$0xff] %v1178_v37 }
 0x268   :  { %v1736_v38 = vpop.f32.mrb[24].mxu1 }
 0x269   :  { %1376 = vst [vmem:[#allocation2 + $0xd0] sm:$0xff] %v1736_v38  ;;  %v1191_v39 = vpop.f32.mrb[25].mxu1 }
 0x26a   :  { %1374 = vst [vmem:[#allocation2 + $0xc0] sm:$0xff] %v1191_v39  ;;  %v1737_v40 = vpop.f32.mrb[26].mxu1 }
 0x26b   :  { %1377 = vst [vmem:[#allocation2 + $0xd8] sm:$0xff] %v1737_v40  ;;  %v1194_v41 = vpop.f32.mrb[27].mxu1 }
 0x26c   :  { %1375 = vst [vmem:[#allocation2 + $0xc8] sm:$0xff] %v1194_v41 }
 0x270   :  { %v1740_v42 = vpop.f32.mrb[28].mxu1 }
 0x271   :  { %1380 = vst [vmem:[#allocation2 + $0xf0] sm:$0xff] %v1740_v42  ;;  %v1207_v43 = vpop.f32.mrb[29].mxu1 }
 0x272   :  { %1378 = vst [vmem:[#allocation2 + $0xe0] sm:$0xff] %v1207_v43  ;;  %v1741_v44 = vpop.f32.mrb[30].mxu1 }
 0x273   :  { %1381 = vst [vmem:[#allocation2 + $0xf8] sm:$0xff] %v1741_v44  ;;  %v1210_v45 = vpop.f32.mrb[31].mxu1 }
 0x274   :  { %1379 = vst [vmem:[#allocation2 + $0xe8] sm:$0xff] %v1210_v45 }
 0x278   :  { %v1744_v46 = vpop.f32.mrb[32].mxu1 }
 0x279   :  { %1384 = vst [vmem:[#allocation2 + $0x110] sm:$0xff] %v1744_v46  ;;  %v1223_v47 = vpop.f32.mrb[33].mxu1 }
 0x27a   :  { %1382 = vst [vmem:[#allocation2 + $0x100] sm:$0xff] %v1223_v47  ;;  %v1745_v48 = vpop.f32.mrb[34].mxu1 }
 0x27b   :  { %1385 = vst [vmem:[#allocation2 + $0x118] sm:$0xff] %v1745_v48  ;;  %v1226_v49 = vpop.f32.mrb[35].mxu1 }
 0x27c   :  { %1383 = vst [vmem:[#allocation2 + $0x108] sm:$0xff] %v1226_v49 }
 0x280   :  { %v1748_v50 = vpop.f32.mrb[36].mxu1 }
 0x281   :  { %1388 = vst [vmem:[#allocation2 + $0x130] sm:$0xff] %v1748_v50  ;;  %v1239_v51 = vpop.f32.mrb[37].mxu1 }
 0x282   :  { %1386 = vst [vmem:[#allocation2 + $0x120] sm:$0xff] %v1239_v51  ;;  %v1749_v6 = vpop.f32.mrb[38].mxu1 }
 0x283   :  { %1389 = vst [vmem:[#allocation2 + $0x138] sm:$0xff] %v1749_v6  ;;  %v1242_v52 = vpop.f32.mrb[39].mxu1 }
 0x284   :  { %1387 = vst [vmem:[#allocation2 + $0x128] sm:$0xff] %v1242_v52 }
 0x288   :  { %v1752_v53 = vpop.f32.mrb[40].mxu1 }
 0x289   :  { %1392 = vst [vmem:[#allocation2 + $0x150] sm:$0xff] %v1752_v53  ;;  %v1255_v54 = vpop.f32.mrb[41].mxu1 }
 0x28a   :  { %1390 = vst [vmem:[#allocation2 + $0x140] sm:$0xff] %v1255_v54  ;;  %v1753_v55 = vpop.f32.mrb[42].mxu1 }
 0x28b   :  { %1393 = vst [vmem:[#allocation2 + $0x158] sm:$0xff] %v1753_v55  ;;  %v1258_v12 = vpop.f32.mrb[43].mxu1 }
 0x28c   :  { %1391 = vst [vmem:[#allocation2 + $0x148] sm:$0xff] %v1258_v12 }
 0x290   :  { %v1756_v56 = vpop.f32.mrb[44].mxu1 }
 0x291   :  { %1396 = vst [vmem:[#allocation2 + $0x170] sm:$0xff] %v1756_v56  ;;  %v1271_v57 = vpop.f32.mrb[45].mxu1 }
 0x292   :  { %1394 = vst [vmem:[#allocation2 + $0x160] sm:$0xff] %v1271_v57  ;;  %v1757_v58 = vpop.f32.mrb[46].mxu1 }
 0x293   :  { %1397 = vst [vmem:[#allocation2 + $0x178] sm:$0xff] %v1757_v58  ;;  %v1274_v59 = vpop.f32.mrb[47].mxu1 }
 0x294   :  { %1395 = vst [vmem:[#allocation2 + $0x168] sm:$0xff] %v1274_v59 }
 0x298   :  { %v1760_v60 = vpop.f32.mrb[48].mxu1 }
 0x299   :  { %1400 = vst [vmem:[#allocation2 + $0x190] sm:$0xff] %v1760_v60  ;;  %v1287_v61 = vpop.f32.mrb[49].mxu1 }
 0x29a   :  { %1398 = vst [vmem:[#allocation2 + $0x180] sm:$0xff] %v1287_v61  ;;  %v1761_v62 = vpop.f32.mrb[50].mxu1 }
 0x29b   :  { %1401 = vst [vmem:[#allocation2 + $0x198] sm:$0xff] %v1761_v62  ;;  %v1290_v63 = vpop.f32.mrb[51].mxu1 }
 0x29c   :  { %1399 = vst [vmem:[#allocation2 + $0x188] sm:$0xff] %v1290_v63 }
 0x2a0   :  { %v1764_v0 = vpop.f32.mrb[52].mxu1 }
 0x2a1   :  { %1404 = vst [vmem:[#allocation2 + $0x1b0] sm:$0xff] %v1764_v0  ;;  %v1303_v1 = vpop.f32.mrb[53].mxu1 }
 0x2a2   :  { %1402 = vst [vmem:[#allocation2 + $0x1a0] sm:$0xff] %v1303_v1  ;;  %v1765_v2 = vpop.f32.mrb[54].mxu1 }
 0x2a3   :  { %1405 = vst [vmem:[#allocation2 + $0x1b8] sm:$0xff] %v1765_v2  ;;  %v1306_v3 = vpop.f32.mrb[55].mxu1 }
 0x2a4   :  { %1403 = vst [vmem:[#allocation2 + $0x1a8] sm:$0xff] %v1306_v3 }
 0x2a8   :  { %v1768_v4 = vpop.f32.mrb[56].mxu1 }
 0x2a9   :  { %1408 = vst [vmem:[#allocation2 + $0x1d0] sm:$0xff] %v1768_v4  ;;  %v1319_v5 = vpop.f32.mrb[57].mxu1 }
 0x2aa   :  { %1406 = vst [vmem:[#allocation2 + $0x1c0] sm:$0xff] %v1319_v5  ;;  %v1769_v7 = vpop.f32.mrb[58].mxu1 }
 0x2ab   :  { %1409 = vst [vmem:[#allocation2 + $0x1d8] sm:$0xff] %v1769_v7  ;;  %v1322_v8 = vpop.f32.mrb[59].mxu1 }
 0x2ac   :  { %1407 = vst [vmem:[#allocation2 + $0x1c8] sm:$0xff] %v1322_v8 }
 0x2b0   :  { %v1772_v9 = vpop.f32.mrb[60].mxu1 }
 0x2b1   :  { %1412 = vst [vmem:[#allocation2 + $0x1f0] sm:$0xff] %v1772_v9  ;;  %v1335_v10 = vpop.f32.mrb[61].mxu1 }
 0x2b2   :  { %1410 = vst [vmem:[#allocation2 + $0x1e0] sm:$0xff] %v1335_v10  ;;  %v1773_v11 = vpop.f32.mrb[62].mxu1 }
 0x2b3   :  { %1413 = vst [vmem:[#allocation2 + $0x1f8] sm:$0xff] %v1773_v11  ;;  %v1338_v13 = vpop.f32.mrb[63].mxu1 }
 0x2b4   :  { %1411 = vst [vmem:[#allocation2 + $0x1e8] sm:$0xff] %v1338_v13 }
 0x2b5   :  { %1798 = shalt.err (!%p1795_p4)
}
 0x2b6   :  { %s1799_s16 = scalar_lea.hbm %s2255_s3, 8192 }
 0x2b7   :  { %p1800_p5 = scmp.ne.s32.totalorder %s2255_s3, %s1799_s16  ;;  %p1803_p6 = scmp.lt.u32.totalorder %s1799_s16, %s2255_s3 }
 0x2b9   :  { %p1805_p7 = pnand %p1803_p6, %p1800_p5 }
 0x2bb   :  { %1808 = shalt.err (!%p1805_p7)
}
 0x2bc   :  { %s1814_s21 = smov 128   ;;  %s1815_s22 = smov 8  }
 0x2bd   :  { %1425 = dma.vmem_to_hbm [thread:$0]  %s1420_s12, 8192, %s2255_s3, [#allocation3], %s1814_s21, %s1814_s21, %s1815_s22  }
 0x2be   :  { %1809 = dma.done.wait [#allocation3], 8192  }
 0x2bf   :  { %1810 = vsyncadd [#allocation3], 4294959104 }
 0x2c0   :  { %1429 = vsyncpa [#allocation3], 1 }

</bundles_post_ra>
